<compile_context>
chip_gen: v7x
topology: tpu7x:2x2x1
jax: 0.10.0
libtpu: 0.0.40
codegen_flags: <defaults>
</compile_context>

<pallas_src>
import functools

import jax
import jax.numpy as jnp
from jax.experimental import pallas as pl
from jax.experimental.pallas import tpu as pltpu

LEVELS = (1, 2, 4)
POOL_TYPES = ("max", "avg", "min")


def _bin_bounds(n, level, i):
    """PyTorch adaptive-pool bin boundaries: [floor(i*n/L), ceil((i+1)*n/L))."""
    lo = (i * n) // level
    hi = -((-(i + 1) * n) // level)  # ceil((i+1)*n / level)
    return lo, hi


def _adaptive_pool(t, level, op):
    """Adaptive-pool a 2-D f32 value `t` (R, C) to a (level, level) grid.

    Returns (grid, flat):
      grid: (level, level) pooled values,
      flat: (1, level*level) row-major flatten of `grid`.

    Implemented as two passes of single-axis keepdims reductions over static
    slices (lane-segment reduce, then sublane-segment reduce) + concats, which
    lower cleanly in Mosaic and avoid scalar reduction trees.  The two-step
    mean is exact even for uneven (ragged) adaptive bins because every row of a
    row-bin shares the same column-bin widths.
    """
    R, C = t.shape

    def _red(seg, axis):
        if op == "max":
            return jnp.max(seg, axis=axis, keepdims=True)
        elif op == "min":
            return jnp.min(seg, axis=axis, keepdims=True)
        else:  # "avg"
            return jnp.mean(seg, axis=axis, keepdims=True)

    # Pass 1: reduce each column bin along the lane axis -> (R, level).
    col_parts = []
    for j in range(level):
        c0, c1 = _bin_bounds(C, level, j)
        col_parts.append(_red(t[:, c0:c1], axis=1))
    colred = jnp.concatenate(col_parts, axis=1) if level > 1 else col_parts[0]

    # Pass 2: reduce each row bin along the sublane axis -> (level, level).
    row_parts = []
    for i in range(level):
        r0, r1 = _bin_bounds(R, level, i)
        row_parts.append(_red(colred[r0:r1, :], axis=0))
    if level > 1:
        grid = jnp.concatenate(row_parts, axis=0)   # (level, level)
        flat = jnp.concatenate(row_parts, axis=1)   # (1, level*level), row-major
    else:
        grid = row_parts[0]
        flat = row_parts[0]
    return grid, flat


def _spp_kernel(x_ref, o_ref, *, H, W, levels, pool_types, out_dim, padded_dim):
    # Whole (H, W) tile resident in VMEM.  f32 throughout: correct on all chips
    # (v5e has no bf16 VPU path); a bf16-native max/min variant for v6e/v7x is a
    # possible further tweak but irrelevant for f32 inputs.
    x = x_ref[...].astype(jnp.float32)

    n_pt = len(pool_types)
    chunks = [None] * (len(levels) * n_pt)   # slot = level_idx * n_pt + pool_idx

    lf = max(levels)
    nested = all(H % lf == 0 and W % lf == 0 and lf % lv == 0 for lv in levels)

    if nested:
        # Touch the input once per pool type (finest level), then derive the
        # coarser levels hierarchically from the tiny (lf, lf) grid.
        for p, pool_type in enumerate(pool_types):
            fine_grid, fine_flat = _adaptive_pool(x, lf, pool_type)
            for li, lv in enumerate(levels):
                if lv == lf:
                    chunks[li * n_pt + p] = fine_flat
                else:
                    _, flat = _adaptive_pool(fine_grid, lv, pool_type)
                    chunks[li * n_pt + p] = flat
    else:
        # Ragged adaptive bins: pool every level directly from the input
        # (hierarchical mean-of-means would be wrong for uneven bins).
        for li, lv in enumerate(levels):
            for p, pool_type in enumerate(pool_types):
                _, flat = _adaptive_pool(x, lv, pool_type)
                chunks[li * n_pt + p] = flat

    out = jnp.concatenate(chunks, axis=1)                       # (1, out_dim)
    if padded_dim > out_dim:
        out = jnp.concatenate(
            [out, jnp.zeros((1, padded_dim - out_dim), jnp.float32)], axis=1)
    # Single lane-dense, unmasked full-tile store.
    o_ref[...] = out.astype(o_ref.dtype)


def spp_layer(x, levels=LEVELS, pool_types=POOL_TYPES):
    """x: (H, W) array. Returns (1, len(pool_types) * sum(l*l for l in levels))."""
    H, W = x.shape
    levels = tuple(levels)
    pool_types = tuple(pool_types)
    out_dim = len(pool_types) * sum(l * l for l in levels)
    padded_dim = pl.cdiv(out_dim, 128) * 128   # lane-dense output width

    kernel = functools.partial(
        _spp_kernel, H=H, W=W, levels=levels, pool_types=pool_types,
        out_dim=out_dim, padded_dim=padded_dim,
    )
    out = pl.pallas_call(
        kernel,
        out_shape=jax.ShapeDtypeStruct((1, padded_dim), x.dtype),
        grid=(1,),
        in_specs=[pl.BlockSpec((H, W), lambda i: (0, 0))],
        out_specs=pl.BlockSpec((1, padded_dim), lambda i: (0, 0)),
        compiler_params=pltpu.CompilerParams(
            dimension_semantics=("arbitrary",)),
    )(x)
    return out[:, :out_dim]


def _spp_reference(x, levels=LEVELS, pool_types=POOL_TYPES):
    """Pure-JAX reference mirroring the PyTorch forward (for correctness check)."""
    H, W = x.shape
    outs = []
    for level in levels:
        for pool_type in pool_types:
            grid = []
            for i in range(level):
                r0, r1 = _bin_bounds(H, level, i)
                row = []
                for j in range(level):
                    c0, c1 = _bin_bounds(W, level, j)
                    patch = x[r0:r1, c0:c1]
                    if pool_type == "max":
                        row.append(jnp.max(patch))
                    elif pool_type == "avg":
                        row.append(jnp.mean(patch))
                    else:
                        row.append(jnp.min(patch))
                grid.append(jnp.stack(row))
            outs.append(jnp.stack(grid).reshape(1, -1))
    return jnp.concatenate(outs, axis=1)


if __name__ == "__main__":
    key = jax.random.PRNGKey(0)
    H, W = 16, 16
    x = jax.random.normal(key, (H, W), dtype=jnp.float32)

    out = spp_layer(x)
    out = jax.block_until_ready(out)

    ref = _spp_reference(x)
    assert out.shape == (1, 63), out.shape
    assert jnp.allclose(out, ref, atol=1e-5, rtol=1e-5), "mismatch vs reference"

    # Also exercise the ragged (non-divisible) fallback path on a small odd shape.
    x2 = jax.random.normal(jax.random.PRNGKey(1), (13, 11), dtype=jnp.float32)
    out2 = jax.block_until_ready(spp_layer(x2))
    ref2 = _spp_reference(x2)
    assert jnp.allclose(out2, ref2, atol=1e-5, rtol=1e-5), "ragged mismatch"

    print("KERNEL_OK")
</pallas_src>

<mosaic_0001>
module attributes {stable_mosaic.version = 11 : i64} {
  func.func @_spp_kernel(%arg0: i32, %arg1: memref<16x16xf32, #tpu.memory_space<vmem>>, %arg2: memref<1x128xf32, #tpu.memory_space<vmem>>) attributes {dimension_semantics = [#tpu.dimension_semantics<arbitrary>], iteration_bounds = array<i64: 1>, scalar_prefetch = 0 : i64, scratch_operands = 0 : i64, tpu.core_type = #tpu.core_type<tc>, window_params = [{pipeline_mode = #tpu.pipeline_mode<synchronous>, transform_indices = @transform_0, window_bounds = array<i64: 16, 16>}, {pipeline_mode = #tpu.pipeline_mode<synchronous>, transform_indices = @transform_1, window_bounds = array<i64: 1, 128>}]} {
    %c0 = arith.constant 0 : index
    %c0_0 = arith.constant 0 : index
    %0 = vector.load %arg1[%c0, %c0_0] : memref<16x16xf32, #tpu.memory_space<vmem>>, vector<16x16xf32>
    %1 = vector.extract_strided_slice %0 {offsets = [0, 0], sizes = [16, 4], strides = [1, 1]} : vector<16x16xf32> to vector<16x4xf32>
    %cst = arith.constant dense<0xFF800000> : vector<16xf32>
    %2 = vector.multi_reduction <maximumf>, %1, %cst [1] : vector<16x4xf32> to vector<16xf32>
    %3 = vector.shape_cast %2 : vector<16xf32> to vector<16x1xf32>
    %4 = vector.extract_strided_slice %0 {offsets = [0, 4], sizes = [16, 4], strides = [1, 1]} : vector<16x16xf32> to vector<16x4xf32>
    %cst_1 = arith.constant dense<0xFF800000> : vector<16xf32>
    %5 = vector.multi_reduction <maximumf>, %4, %cst_1 [1] : vector<16x4xf32> to vector<16xf32>
    %6 = vector.shape_cast %5 : vector<16xf32> to vector<16x1xf32>
    %7 = vector.extract_strided_slice %0 {offsets = [0, 8], sizes = [16, 4], strides = [1, 1]} : vector<16x16xf32> to vector<16x4xf32>
    %cst_2 = arith.constant dense<0xFF800000> : vector<16xf32>
    %8 = vector.multi_reduction <maximumf>, %7, %cst_2 [1] : vector<16x4xf32> to vector<16xf32>
    %9 = vector.shape_cast %8 : vector<16xf32> to vector<16x1xf32>
    %10 = vector.extract_strided_slice %0 {offsets = [0, 12], sizes = [16, 4], strides = [1, 1]} : vector<16x16xf32> to vector<16x4xf32>
    %cst_3 = arith.constant dense<0xFF800000> : vector<16xf32>
    %11 = vector.multi_reduction <maximumf>, %10, %cst_3 [1] : vector<16x4xf32> to vector<16xf32>
    %12 = vector.shape_cast %11 : vector<16xf32> to vector<16x1xf32>
    %13 = tpu.concatenate %3, %6, %9, %12 in 1 : vector<16x1xf32>, vector<16x1xf32>, vector<16x1xf32>, vector<16x1xf32> -> vector<16x4xf32>
    %14 = vector.extract_strided_slice %13 {offsets = [0, 0], sizes = [4, 4], strides = [1, 1]} : vector<16x4xf32> to vector<4x4xf32>
    %cst_4 = arith.constant dense<0xFF800000> : vector<4xf32>
    %15 = vector.multi_reduction <maximumf>, %14, %cst_4 [0] : vector<4x4xf32> to vector<4xf32>
    %16 = vector.shape_cast %15 : vector<4xf32> to vector<1x4xf32>
    %17 = vector.extract_strided_slice %13 {offsets = [4, 0], sizes = [4, 4], strides = [1, 1]} : vector<16x4xf32> to vector<4x4xf32>
    %cst_5 = arith.constant dense<0xFF800000> : vector<4xf32>
    %18 = vector.multi_reduction <maximumf>, %17, %cst_5 [0] : vector<4x4xf32> to vector<4xf32>
    %19 = vector.shape_cast %18 : vector<4xf32> to vector<1x4xf32>
    %20 = vector.extract_strided_slice %13 {offsets = [8, 0], sizes = [4, 4], strides = [1, 1]} : vector<16x4xf32> to vector<4x4xf32>
    %cst_6 = arith.constant dense<0xFF800000> : vector<4xf32>
    %21 = vector.multi_reduction <maximumf>, %20, %cst_6 [0] : vector<4x4xf32> to vector<4xf32>
    %22 = vector.shape_cast %21 : vector<4xf32> to vector<1x4xf32>
    %23 = vector.extract_strided_slice %13 {offsets = [12, 0], sizes = [4, 4], strides = [1, 1]} : vector<16x4xf32> to vector<4x4xf32>
    %cst_7 = arith.constant dense<0xFF800000> : vector<4xf32>
    %24 = vector.multi_reduction <maximumf>, %23, %cst_7 [0] : vector<4x4xf32> to vector<4xf32>
    %25 = vector.shape_cast %24 : vector<4xf32> to vector<1x4xf32>
    %26 = tpu.concatenate %16, %19, %22, %25 in 0 : vector<1x4xf32>, vector<1x4xf32>, vector<1x4xf32>, vector<1x4xf32> -> vector<4x4xf32>
    %27 = tpu.concatenate %16, %19, %22, %25 in 1 : vector<1x4xf32>, vector<1x4xf32>, vector<1x4xf32>, vector<1x4xf32> -> vector<1x16xf32>
    %cst_8 = arith.constant dense<0xFF800000> : vector<4xf32>
    %28 = vector.multi_reduction <maximumf>, %26, %cst_8 [1] : vector<4x4xf32> to vector<4xf32>
    %29 = vector.shape_cast %28 : vector<4xf32> to vector<4x1xf32>
    %cst_9 = arith.constant dense<0xFF800000> : vector<1xf32>
    %30 = vector.multi_reduction <maximumf>, %29, %cst_9 [0] : vector<4x1xf32> to vector<1xf32>
    %31 = vector.shape_cast %30 : vector<1xf32> to vector<1x1xf32>
    %32 = vector.extract_strided_slice %26 {offsets = [0, 0], sizes = [4, 2], strides = [1, 1]} : vector<4x4xf32> to vector<4x2xf32>
    %cst_10 = arith.constant dense<0xFF800000> : vector<4xf32>
    %33 = vector.multi_reduction <maximumf>, %32, %cst_10 [1] : vector<4x2xf32> to vector<4xf32>
    %34 = vector.shape_cast %33 : vector<4xf32> to vector<4x1xf32>
    %35 = vector.extract_strided_slice %26 {offsets = [0, 2], sizes = [4, 2], strides = [1, 1]} : vector<4x4xf32> to vector<4x2xf32>
    %cst_11 = arith.constant dense<0xFF800000> : vector<4xf32>
    %36 = vector.multi_reduction <maximumf>, %35, %cst_11 [1] : vector<4x2xf32> to vector<4xf32>
    %37 = vector.shape_cast %36 : vector<4xf32> to vector<4x1xf32>
    %38 = tpu.concatenate %34, %37 in 1 : vector<4x1xf32>, vector<4x1xf32> -> vector<4x2xf32>
    %39 = vector.extract_strided_slice %38 {offsets = [0, 0], sizes = [2, 2], strides = [1, 1]} : vector<4x2xf32> to vector<2x2xf32>
    %cst_12 = arith.constant dense<0xFF800000> : vector<2xf32>
    %40 = vector.multi_reduction <maximumf>, %39, %cst_12 [0] : vector<2x2xf32> to vector<2xf32>
    %41 = vector.shape_cast %40 : vector<2xf32> to vector<1x2xf32>
    %42 = vector.extract_strided_slice %38 {offsets = [2, 0], sizes = [2, 2], strides = [1, 1]} : vector<4x2xf32> to vector<2x2xf32>
    %cst_13 = arith.constant dense<0xFF800000> : vector<2xf32>
    %43 = vector.multi_reduction <maximumf>, %42, %cst_13 [0] : vector<2x2xf32> to vector<2xf32>
    %44 = vector.shape_cast %43 : vector<2xf32> to vector<1x2xf32>
    %45 = tpu.concatenate %41, %44 in 1 : vector<1x2xf32>, vector<1x2xf32> -> vector<1x4xf32>
    %46 = vector.extract_strided_slice %0 {offsets = [0, 0], sizes = [16, 4], strides = [1, 1]} : vector<16x16xf32> to vector<16x4xf32>
    %cst_14 = arith.constant dense<0.000000e+00> : vector<16xf32>
    %47 = vector.multi_reduction <add>, %46, %cst_14 [1] : vector<16x4xf32> to vector<16xf32>
    %48 = vector.shape_cast %47 : vector<16xf32> to vector<16x1xf32>
    %cst_15 = arith.constant 4.000000e+00 : f32
    %49 = vector.broadcast %cst_15 : f32 to vector<16x1xf32>
    %50 = arith.divf %48, %49 : vector<16x1xf32>
    %51 = vector.extract_strided_slice %0 {offsets = [0, 4], sizes = [16, 4], strides = [1, 1]} : vector<16x16xf32> to vector<16x4xf32>
    %cst_16 = arith.constant dense<0.000000e+00> : vector<16xf32>
    %52 = vector.multi_reduction <add>, %51, %cst_16 [1] : vector<16x4xf32> to vector<16xf32>
    %53 = vector.shape_cast %52 : vector<16xf32> to vector<16x1xf32>
    %cst_17 = arith.constant 4.000000e+00 : f32
    %54 = vector.broadcast %cst_17 : f32 to vector<16x1xf32>
    %55 = arith.divf %53, %54 : vector<16x1xf32>
    %56 = vector.extract_strided_slice %0 {offsets = [0, 8], sizes = [16, 4], strides = [1, 1]} : vector<16x16xf32> to vector<16x4xf32>
    %cst_18 = arith.constant dense<0.000000e+00> : vector<16xf32>
    %57 = vector.multi_reduction <add>, %56, %cst_18 [1] : vector<16x4xf32> to vector<16xf32>
    %58 = vector.shape_cast %57 : vector<16xf32> to vector<16x1xf32>
    %cst_19 = arith.constant 4.000000e+00 : f32
    %59 = vector.broadcast %cst_19 : f32 to vector<16x1xf32>
    %60 = arith.divf %58, %59 : vector<16x1xf32>
    %61 = vector.extract_strided_slice %0 {offsets = [0, 12], sizes = [16, 4], strides = [1, 1]} : vector<16x16xf32> to vector<16x4xf32>
    %cst_20 = arith.constant dense<0.000000e+00> : vector<16xf32>
    %62 = vector.multi_reduction <add>, %61, %cst_20 [1] : vector<16x4xf32> to vector<16xf32>
    %63 = vector.shape_cast %62 : vector<16xf32> to vector<16x1xf32>
    %cst_21 = arith.constant 4.000000e+00 : f32
    %64 = vector.broadcast %cst_21 : f32 to vector<16x1xf32>
    %65 = arith.divf %63, %64 : vector<16x1xf32>
    %66 = tpu.concatenate %50, %55, %60, %65 in 1 : vector<16x1xf32>, vector<16x1xf32>, vector<16x1xf32>, vector<16x1xf32> -> vector<16x4xf32>
    %67 = vector.extract_strided_slice %66 {offsets = [0, 0], sizes = [4, 4], strides = [1, 1]} : vector<16x4xf32> to vector<4x4xf32>
    %cst_22 = arith.constant dense<0.000000e+00> : vector<4xf32>
    %68 = vector.multi_reduction <add>, %67, %cst_22 [0] : vector<4x4xf32> to vector<4xf32>
    %69 = vector.shape_cast %68 : vector<4xf32> to vector<1x4xf32>
    %cst_23 = arith.constant 4.000000e+00 : f32
    %70 = vector.broadcast %cst_23 : f32 to vector<1x4xf32>
    %71 = arith.divf %69, %70 : vector<1x4xf32>
    %72 = vector.extract_strided_slice %66 {offsets = [4, 0], sizes = [4, 4], strides = [1, 1]} : vector<16x4xf32> to vector<4x4xf32>
    %cst_24 = arith.constant dense<0.000000e+00> : vector<4xf32>
    %73 = vector.multi_reduction <add>, %72, %cst_24 [0] : vector<4x4xf32> to vector<4xf32>
    %74 = vector.shape_cast %73 : vector<4xf32> to vector<1x4xf32>
    %cst_25 = arith.constant 4.000000e+00 : f32
    %75 = vector.broadcast %cst_25 : f32 to vector<1x4xf32>
    %76 = arith.divf %74, %75 : vector<1x4xf32>
    %77 = vector.extract_strided_slice %66 {offsets = [8, 0], sizes = [4, 4], strides = [1, 1]} : vector<16x4xf32> to vector<4x4xf32>
    %cst_26 = arith.constant dense<0.000000e+00> : vector<4xf32>
    %78 = vector.multi_reduction <add>, %77, %cst_26 [0] : vector<4x4xf32> to vector<4xf32>
    %79 = vector.shape_cast %78 : vector<4xf32> to vector<1x4xf32>
    %cst_27 = arith.constant 4.000000e+00 : f32
    %80 = vector.broadcast %cst_27 : f32 to vector<1x4xf32>
    %81 = arith.divf %79, %80 : vector<1x4xf32>
    %82 = vector.extract_strided_slice %66 {offsets = [12, 0], sizes = [4, 4], strides = [1, 1]} : vector<16x4xf32> to vector<4x4xf32>
    %cst_28 = arith.constant dense<0.000000e+00> : vector<4xf32>
    %83 = vector.multi_reduction <add>, %82, %cst_28 [0] : vector<4x4xf32> to vector<4xf32>
    %84 = vector.shape_cast %83 : vector<4xf32> to vector<1x4xf32>
    %cst_29 = arith.constant 4.000000e+00 : f32
    %85 = vector.broadcast %cst_29 : f32 to vector<1x4xf32>
    %86 = arith.divf %84, %85 : vector<1x4xf32>
    %87 = tpu.concatenate %71, %76, %81, %86 in 0 : vector<1x4xf32>, vector<1x4xf32>, vector<1x4xf32>, vector<1x4xf32> -> vector<4x4xf32>
    %88 = tpu.concatenate %71, %76, %81, %86 in 1 : vector<1x4xf32>, vector<1x4xf32>, vector<1x4xf32>, vector<1x4xf32> -> vector<1x16xf32>
    %cst_30 = arith.constant dense<0.000000e+00> : vector<4xf32>
    %89 = vector.multi_reduction <add>, %87, %cst_30 [1] : vector<4x4xf32> to vector<4xf32>
    %90 = vector.shape_cast %89 : vector<4xf32> to vector<4x1xf32>
    %cst_31 = arith.constant 4.000000e+00 : f32
    %91 = vector.broadcast %cst_31 : f32 to vector<4x1xf32>
    %92 = arith.divf %90, %91 : vector<4x1xf32>
    %cst_32 = arith.constant dense<0.000000e+00> : vector<1xf32>
    %93 = vector.multi_reduction <add>, %92, %cst_32 [0] : vector<4x1xf32> to vector<1xf32>
    %94 = vector.shape_cast %93 : vector<1xf32> to vector<1x1xf32>
    %cst_33 = arith.constant 4.000000e+00 : f32
    %95 = vector.broadcast %cst_33 : f32 to vector<1x1xf32>
    %96 = arith.divf %94, %95 : vector<1x1xf32>
    %97 = vector.extract_strided_slice %87 {offsets = [0, 0], sizes = [4, 2], strides = [1, 1]} : vector<4x4xf32> to vector<4x2xf32>
    %cst_34 = arith.constant dense<0.000000e+00> : vector<4xf32>
    %98 = vector.multi_reduction <add>, %97, %cst_34 [1] : vector<4x2xf32> to vector<4xf32>
    %99 = vector.shape_cast %98 : vector<4xf32> to vector<4x1xf32>
    %cst_35 = arith.constant 2.000000e+00 : f32
    %100 = vector.broadcast %cst_35 : f32 to vector<4x1xf32>
    %101 = arith.divf %99, %100 : vector<4x1xf32>
    %102 = vector.extract_strided_slice %87 {offsets = [0, 2], sizes = [4, 2], strides = [1, 1]} : vector<4x4xf32> to vector<4x2xf32>
    %cst_36 = arith.constant dense<0.000000e+00> : vector<4xf32>
    %103 = vector.multi_reduction <add>, %102, %cst_36 [1] : vector<4x2xf32> to vector<4xf32>
    %104 = vector.shape_cast %103 : vector<4xf32> to vector<4x1xf32>
    %cst_37 = arith.constant 2.000000e+00 : f32
    %105 = vector.broadcast %cst_37 : f32 to vector<4x1xf32>
    %106 = arith.divf %104, %105 : vector<4x1xf32>
    %107 = tpu.concatenate %101, %106 in 1 : vector<4x1xf32>, vector<4x1xf32> -> vector<4x2xf32>
    %108 = vector.extract_strided_slice %107 {offsets = [0, 0], sizes = [2, 2], strides = [1, 1]} : vector<4x2xf32> to vector<2x2xf32>
    %cst_38 = arith.constant dense<0.000000e+00> : vector<2xf32>
    %109 = vector.multi_reduction <add>, %108, %cst_38 [0] : vector<2x2xf32> to vector<2xf32>
    %110 = vector.shape_cast %109 : vector<2xf32> to vector<1x2xf32>
    %cst_39 = arith.constant 2.000000e+00 : f32
    %111 = vector.broadcast %cst_39 : f32 to vector<1x2xf32>
    %112 = arith.divf %110, %111 : vector<1x2xf32>
    %113 = vector.extract_strided_slice %107 {offsets = [2, 0], sizes = [2, 2], strides = [1, 1]} : vector<4x2xf32> to vector<2x2xf32>
    %cst_40 = arith.constant dense<0.000000e+00> : vector<2xf32>
    %114 = vector.multi_reduction <add>, %113, %cst_40 [0] : vector<2x2xf32> to vector<2xf32>
    %115 = vector.shape_cast %114 : vector<2xf32> to vector<1x2xf32>
    %cst_41 = arith.constant 2.000000e+00 : f32
    %116 = vector.broadcast %cst_41 : f32 to vector<1x2xf32>
    %117 = arith.divf %115, %116 : vector<1x2xf32>
    %118 = tpu.concatenate %112, %117 in 1 : vector<1x2xf32>, vector<1x2xf32> -> vector<1x4xf32>
    %119 = vector.extract_strided_slice %0 {offsets = [0, 0], sizes = [16, 4], strides = [1, 1]} : vector<16x16xf32> to vector<16x4xf32>
    %cst_42 = arith.constant dense<0x7F800000> : vector<16xf32>
    %120 = vector.multi_reduction <minimumf>, %119, %cst_42 [1] : vector<16x4xf32> to vector<16xf32>
    %121 = vector.shape_cast %120 : vector<16xf32> to vector<16x1xf32>
    %122 = vector.extract_strided_slice %0 {offsets = [0, 4], sizes = [16, 4], strides = [1, 1]} : vector<16x16xf32> to vector<16x4xf32>
    %cst_43 = arith.constant dense<0x7F800000> : vector<16xf32>
    %123 = vector.multi_reduction <minimumf>, %122, %cst_43 [1] : vector<16x4xf32> to vector<16xf32>
    %124 = vector.shape_cast %123 : vector<16xf32> to vector<16x1xf32>
    %125 = vector.extract_strided_slice %0 {offsets = [0, 8], sizes = [16, 4], strides = [1, 1]} : vector<16x16xf32> to vector<16x4xf32>
    %cst_44 = arith.constant dense<0x7F800000> : vector<16xf32>
    %126 = vector.multi_reduction <minimumf>, %125, %cst_44 [1] : vector<16x4xf32> to vector<16xf32>
    %127 = vector.shape_cast %126 : vector<16xf32> to vector<16x1xf32>
    %128 = vector.extract_strided_slice %0 {offsets = [0, 12], sizes = [16, 4], strides = [1, 1]} : vector<16x16xf32> to vector<16x4xf32>
    %cst_45 = arith.constant dense<0x7F800000> : vector<16xf32>
    %129 = vector.multi_reduction <minimumf>, %128, %cst_45 [1] : vector<16x4xf32> to vector<16xf32>
    %130 = vector.shape_cast %129 : vector<16xf32> to vector<16x1xf32>
    %131 = tpu.concatenate %121, %124, %127, %130 in 1 : vector<16x1xf32>, vector<16x1xf32>, vector<16x1xf32>, vector<16x1xf32> -> vector<16x4xf32>
    %132 = vector.extract_strided_slice %131 {offsets = [0, 0], sizes = [4, 4], strides = [1, 1]} : vector<16x4xf32> to vector<4x4xf32>
    %cst_46 = arith.constant dense<0x7F800000> : vector<4xf32>
    %133 = vector.multi_reduction <minimumf>, %132, %cst_46 [0] : vector<4x4xf32> to vector<4xf32>
    %134 = vector.shape_cast %133 : vector<4xf32> to vector<1x4xf32>
    %135 = vector.extract_strided_slice %131 {offsets = [4, 0], sizes = [4, 4], strides = [1, 1]} : vector<16x4xf32> to vector<4x4xf32>
    %cst_47 = arith.constant dense<0x7F800000> : vector<4xf32>
    %136 = vector.multi_reduction <minimumf>, %135, %cst_47 [0] : vector<4x4xf32> to vector<4xf32>
    %137 = vector.shape_cast %136 : vector<4xf32> to vector<1x4xf32>
    %138 = vector.extract_strided_slice %131 {offsets = [8, 0], sizes = [4, 4], strides = [1, 1]} : vector<16x4xf32> to vector<4x4xf32>
    %cst_48 = arith.constant dense<0x7F800000> : vector<4xf32>
    %139 = vector.multi_reduction <minimumf>, %138, %cst_48 [0] : vector<4x4xf32> to vector<4xf32>
    %140 = vector.shape_cast %139 : vector<4xf32> to vector<1x4xf32>
    %141 = vector.extract_strided_slice %131 {offsets = [12, 0], sizes = [4, 4], strides = [1, 1]} : vector<16x4xf32> to vector<4x4xf32>
    %cst_49 = arith.constant dense<0x7F800000> : vector<4xf32>
    %142 = vector.multi_reduction <minimumf>, %141, %cst_49 [0] : vector<4x4xf32> to vector<4xf32>
    %143 = vector.shape_cast %142 : vector<4xf32> to vector<1x4xf32>
    %144 = tpu.concatenate %134, %137, %140, %143 in 0 : vector<1x4xf32>, vector<1x4xf32>, vector<1x4xf32>, vector<1x4xf32> -> vector<4x4xf32>
    %145 = tpu.concatenate %134, %137, %140, %143 in 1 : vector<1x4xf32>, vector<1x4xf32>, vector<1x4xf32>, vector<1x4xf32> -> vector<1x16xf32>
    %cst_50 = arith.constant dense<0x7F800000> : vector<4xf32>
    %146 = vector.multi_reduction <minimumf>, %144, %cst_50 [1] : vector<4x4xf32> to vector<4xf32>
    %147 = vector.shape_cast %146 : vector<4xf32> to vector<4x1xf32>
    %cst_51 = arith.constant dense<0x7F800000> : vector<1xf32>
    %148 = vector.multi_reduction <minimumf>, %147, %cst_51 [0] : vector<4x1xf32> to vector<1xf32>
    %149 = vector.shape_cast %148 : vector<1xf32> to vector<1x1xf32>
    %150 = vector.extract_strided_slice %144 {offsets = [0, 0], sizes = [4, 2], strides = [1, 1]} : vector<4x4xf32> to vector<4x2xf32>
    %cst_52 = arith.constant dense<0x7F800000> : vector<4xf32>
    %151 = vector.multi_reduction <minimumf>, %150, %cst_52 [1] : vector<4x2xf32> to vector<4xf32>
    %152 = vector.shape_cast %151 : vector<4xf32> to vector<4x1xf32>
    %153 = vector.extract_strided_slice %144 {offsets = [0, 2], sizes = [4, 2], strides = [1, 1]} : vector<4x4xf32> to vector<4x2xf32>
    %cst_53 = arith.constant dense<0x7F800000> : vector<4xf32>
    %154 = vector.multi_reduction <minimumf>, %153, %cst_53 [1] : vector<4x2xf32> to vector<4xf32>
    %155 = vector.shape_cast %154 : vector<4xf32> to vector<4x1xf32>
    %156 = tpu.concatenate %152, %155 in 1 : vector<4x1xf32>, vector<4x1xf32> -> vector<4x2xf32>
    %157 = vector.extract_strided_slice %156 {offsets = [0, 0], sizes = [2, 2], strides = [1, 1]} : vector<4x2xf32> to vector<2x2xf32>
    %cst_54 = arith.constant dense<0x7F800000> : vector<2xf32>
    %158 = vector.multi_reduction <minimumf>, %157, %cst_54 [0] : vector<2x2xf32> to vector<2xf32>
    %159 = vector.shape_cast %158 : vector<2xf32> to vector<1x2xf32>
    %160 = vector.extract_strided_slice %156 {offsets = [2, 0], sizes = [2, 2], strides = [1, 1]} : vector<4x2xf32> to vector<2x2xf32>
    %cst_55 = arith.constant dense<0x7F800000> : vector<2xf32>
    %161 = vector.multi_reduction <minimumf>, %160, %cst_55 [0] : vector<2x2xf32> to vector<2xf32>
    %162 = vector.shape_cast %161 : vector<2xf32> to vector<1x2xf32>
    %163 = tpu.concatenate %159, %162 in 1 : vector<1x2xf32>, vector<1x2xf32> -> vector<1x4xf32>
    %164 = tpu.concatenate %31, %96, %149, %45, %118, %163, %27, %88, %145 in 1 : vector<1x1xf32>, vector<1x1xf32>, vector<1x1xf32>, vector<1x4xf32>, vector<1x4xf32>, vector<1x4xf32>, vector<1x16xf32>, vector<1x16xf32>, vector<1x16xf32> -> vector<1x63xf32>
    %cst_56 = arith.constant 0.000000e+00 : f32
    %165 = vector.broadcast %cst_56 : f32 to vector<1x65xf32>
    %166 = tpu.concatenate %164, %165 in 1 : vector<1x63xf32>, vector<1x65xf32> -> vector<1x128xf32>
    %c0_57 = arith.constant 0 : index
    %c0_58 = arith.constant 0 : index
    %167 = vector.load %arg2[%c0_57, %c0_58] : memref<1x128xf32, #tpu.memory_space<vmem>>, vector<1x128xf32>
    tpu.vector_store %arg2[%c0_57, %c0_58], %166 {strides = array<i32>} : memref<1x128xf32, #tpu.memory_space<vmem>>, vector<1x128xf32>,
    return
  }
  func.func @transform_0(%arg0: i32) -> (i32, i32) {
    %c0_i32 = arith.constant 0 : i32
    %c0_i32_0 = arith.constant 0 : i32
    %c0_i32_1 = arith.constant 0 : i32
    return %c0_i32, %c0_i32_0 : i32, i32
  }
  func.func @transform_1(%arg0: i32) -> (i32, i32) {
    %c0_i32 = arith.constant 0 : i32
    %c0_i32_0 = arith.constant 0 : i32
    %c0_i32_1 = arith.constant 0 : i32
    return %c0_i32, %c0_i32_0 : i32, i32
  }
}

</mosaic_0001>

<bundles_post_ra>
// kernel: tpu_custom_call.1
= control target key start
LH: loop header
LB: loop body
LE: loop exit
PB: predicated region body
PF: predicated region fallthrough
CT: control target
= control target key end

     0   :  { %6 = vsyncpa [#allocation3], 0  ;;  %s783_s0 = inlined_call_operand.hbm [shape: f32[16,16], index: 0, kind: input, shape index: {}]   ;;  %s784_s1 = inlined_call_operand.hbm [shape: f32[1,128], index: 1, kind: output, shape index: {}]  }
   0x1   :  { %7 = vsyncpa [#allocation4], 0  ;;  %s553_s6 = smov [#allocation2]   ;;  %s505_s10 = scalar_lea.hbm %s783_s0, 256 }
   0x2   :  { %s13_s7 = sshll.u32 %s553_s6, 4  ;;  %p506_p0 = scmp.ne.s32.totalorder %s783_s0, %s505_s10  ;;  %s14_s7 = int_to_ptr.vmem [resolvable:$true] %s13_s7 }
   0x3   :  { %p509_p1 = scmp.lt.u32.totalorder %s505_s10, %s783_s0 }
   0x5   :  { %p511_p2 = pnand %p509_p1, %p506_p0 }
   0x7   :  { %514 = shalt.err (!%p511_p2)
}
   0x8   :  { %s515_s15 = scalar_lea.vmem %s14_s7, 256  ;;  %p520_p4 = scmp.lt.s32.totalorder %s14_s7, %s14_s7 }
   0x9   :  { %p516_p3 = scmp.ne.s32.totalorder %s14_s7, %s515_s15  ;;  %p521_p5 = scmp.lt.s32.totalorder %s515_s15, %s515_s15 }
   0xb   :  { %p522_p6 = por %p521_p5, %p520_p4 }
   0xd   :  { %p523_p7 = pnand %p522_p6, %p516_p3 }
   0xf   :  { %526 = shalt.err (!%p523_p7)
}
  0x10   :  { %s554_s16 = smov 128   ;;  %s555_s17 = smov 8  }
  0x11   :  { %19 = dma.hbm_to_vmem [thread:$0]  %s783_s0, 256, %s14_s7, [#allocation3], %s554_s16, %s554_s16, %s555_s17  }
  0x12   :  { %549 = dma.done.wait [#allocation3], 256  }
  0x13   :  { %550 = vsyncadd [#allocation3], 4294967040  ;;  %v593_v0 = vld [vmem:[#allocation2] sm:$0xff]  ;;  %v595_v1 = vld [vmem:[#allocation2 + $0x8] sm:$0xff]  ;;  %s556_s20 = smov 124   ;;  %s557_s21 = smov 120  }
  0x14   :  { %167 = vrot.lane.b32.xlu0 %v593_v0, %s556_s20  ;;  %169 = vrot.lane.b32.xlu1 %v595_v1, %s556_s20  ;;  %s558_s22 = smov 116   ;;  %vm25_vm0 = vcmask 31744   ;;  %vm32_vm1 = vcmask 64544   ;;  %vm39_vm2 = vcmask 97344   ;;  %vm46_vm3 = vcmask 130144   ;;  %s559_s0 = smov 126  }
  0x15   :  { %v156_v2 = vsel %vm25_vm0, %v593_v0, 0.0  ;;  %v159_v3 = vsel %vm25_vm0, %v595_v1, 0.0  ;;  %v26_v16 = vsel %vm25_vm0, %v593_v0, -inf  ;;  %v33_v17 = vsel %vm32_vm1, %v593_v0, -inf  ;;  %s560_s23 = smov 4   ;;  %s561_s24 = smov 12  }
  0x16   :  { %v29_v18 = vsel %vm25_vm0, %v595_v1, -inf  ;;  %v36_v19 = vsel %vm32_vm1, %v595_v1, -inf  ;;  %v40_v20 = vsel %vm39_vm2, %v593_v0, -inf  ;;  %v43_v21 = vsel %vm39_vm2, %v595_v1, -inf  ;;  %s562_s25 = smov 2   ;;  %s563_s26 = smov 3  }
  0x17   :  { %v47_v22 = vsel %vm46_vm3, %v593_v0, -inf  ;;  %v321_v23 = vsel %vm25_vm0, %v593_v0, inf  ;;  %v327_v24 = vsel %vm32_vm1, %v593_v0, inf  ;;  %v50_v25 = vsel %vm46_vm3, %v595_v1, -inf  ;;  %s564_s27 = smov 7   ;;  %s565_s28 = smov 11  }
  0x18   :  { %181 = vrot.lane.b32.xlu0 %v593_v0, %s557_s21  ;;  %195 = vrot.lane.b32.xlu1 %v593_v0, %s558_s22  ;;  %v324_v26 = vsel %vm25_vm0, %v595_v1, inf  ;;  %v330_v27 = vsel %vm32_vm1, %v595_v1, inf  ;;  %v333_v28 = vsel %vm39_vm2, %v593_v0, inf  ;;  %v336_v29 = vsel %vm39_vm2, %v595_v1, inf  ;;  %s566_s29 = smov 15   ;;  %s567_s30 = smov 31  }
  0x19   :  { %v339_v30 = vsel %vm46_vm3, %v593_v0, inf  ;;  %v342_v31 = vsel %vm46_vm3, %v595_v1, inf  ;;  %vm53_vm4 = vcmask 7168   ;;  %vm56_vm5 = vcmask 15360   ;;  %s568_s2 = smov 47   ;;  %s569_s3 = smov [#allocation5]  }
  0x1a   :  { %vm59_vm6 = vcmask 23552   ;;  %vm62_vm7 = vcmask 27648   ;;  %vm70_vm8 = vcmask 31748   ;;  %vm92_vm9 = vcmask 1040384   ;;  %s479_s4 = sshll.u32 %s569_s3, 4  ;;  %s480_s4 = int_to_ptr.vmem [resolvable:$true] %s479_s4 }
  0x1b   :  { %vm94_vm10 = vcmask 1041408   ;;  %vm96_vm11 = vcmask 1042432   ;;  %vm130_vm12 = vcmask 27664   ;;  %vm126_vm13 = vcmask 11264   ;;  %s527_s5 = scalar_lea.vmem %s480_s4, 16  ;;  %s531_s6 = scalar_lea.vmem %s480_s4, 32 }
  0x1c   :  { %183 = vrot.lane.b32.xlu0 %v595_v1, %s557_s21  ;;  %197 = vrot.lane.b32.xlu1 %v595_v1, %s558_s22  ;;  %vm111_vm14 = vcmask 64512   ;;  %vm113_vm15 = vcmask 97280   ;;  %vm143_vm1 = vcmask 11266   ;;  %vm135_vm2 = vcmask 9216   ;;  %p528_p8 = scmp.ne.s32.totalorder %s480_s4, %s527_s5  ;;  %p532_p9 = scmp.lt.s32.totalorder %s480_s4, %s480_s4 }
  0x1d   :  { %vm118_vm3 = vcmask 1043456   ;;  %p533_p10 = scmp.lt.s32.totalorder %s531_s6, %s527_s5 }
  0x1f   :  { %p534_p11 = por %p533_p10, %p532_p9 }
  0x21   :  { %p535_p12 = pnand %p534_p11, %p528_p8 }
  0x3b   :  { %157 = vadd.xlane.f32.xlu0 %v156_v2 }
  0x3f   :  { %160 = vadd.xlane.f32.xlu0 %v159_v3 }
  0x86   :  { %v168_v4 = vpop.permute.xlu0 %167  ;;  %v170_v5 = vpop.permute.xlu1 %169 }
  0x87   :  { %v173_v6 = vsel %vm25_vm0, %v168_v4, 0.0  ;;  %v176_v7 = vsel %vm25_vm0, %v170_v5, 0.0 }
  0x88   :  { %174 = vadd.xlane.f32.xlu1 %v173_v6 }
  0x8a   :  { %v182_v8 = vpop.permute.xlu0 %181  ;;  %v196_v9 = vpop.permute.xlu1 %195 }
  0x8b   :  { %v187_v10 = vsel %vm25_vm0, %v182_v8, 0.0  ;;  %v201_v11 = vsel %vm25_vm0, %v196_v9, 0.0 }
  0x8c   :  { %177 = vadd.xlane.f32.xlu1 %v176_v7  ;;  %188 = vadd.xlane.f32.xlu0 %v187_v10 }
  0x8e   :  { %v184_v12 = vpop.permute.xlu0 %183  ;;  %v198_v13 = vpop.permute.xlu1 %197 }
  0x8f   :  { %v190_v14 = vsel %vm25_vm0, %v184_v12, 0.0  ;;  %v204_v15 = vsel %vm25_vm0, %v198_v13, 0.0 }
  0x90   :  { %191 = vadd.xlane.f32.xlu1 %v190_v14  ;;  %202 = vadd.xlane.f32.xlu0 %v201_v11 }
  0x94   :  { %205 = vadd.xlane.f32.xlu0 %v204_v15  ;;  %27 = vmax.xlane.f32.xlu1 %v26_v16 }
  0x98   :  { %34 = vmax.xlane.f32.xlu0 %v33_v17  ;;  %30 = vmax.xlane.f32.xlu1 %v29_v18 }
  0x9c   :  { %37 = vmax.xlane.f32.xlu0 %v36_v19  ;;  %41 = vmax.xlane.f32.xlu1 %v40_v20 }
  0xa0   :  { %44 = vmax.xlane.f32.xlu0 %v43_v21  ;;  %48 = vmax.xlane.f32.xlu1 %v47_v22 }
  0xa4   :  { %322 = vmin.xlane.f32.xlu0 %v321_v23  ;;  %328 = vmin.xlane.f32.xlu1 %v327_v24 }
  0xa8   :  { %51 = vmax.xlane.f32.xlu0 %v50_v25  ;;  %325 = vmin.xlane.f32.xlu1 %v324_v26 }
  0xac   :  { %331 = vmin.xlane.f32.xlu0 %v330_v27  ;;  %334 = vmin.xlane.f32.xlu1 %v333_v28 }
  0xb0   :  { %337 = vmin.xlane.f32.xlu0 %v336_v29  ;;  %340 = vmin.xlane.f32.xlu1 %v339_v30 }
  0xb4   :  { %343 = vmin.xlane.f32.xlu0 %v342_v31 }
  0xc8   :  { %v158_v32 = vpop.xlane.xlu0 %157 }
  0xc9   :  { %v163_v39 = vmul.f32 0.25, %v158_v32 }
  0xcc   :  { %v161_v33 = vpop.xlane.xlu0 %160 }
  0xcd   :  { %v164_v47 = vmul.f32 0.25, %v161_v33 }
 0x115   :  { %v175_v34 = vpop.xlane.xlu1 %174 }
 0x116   :  { %v179_v37 = vmul.f32 0.25, %v175_v34 }
 0x118   :  { %v209_v42 = vsel %vm53_vm4, %v163_v39, %v179_v37 }
 0x119   :  { %v178_v35 = vpop.xlane.xlu1 %177  ;;  %v189_v36 = vpop.xlane.xlu0 %188 }
 0x11a   :  { %v193_v38 = vmul.f32 0.25, %v189_v36  ;;  %v180_v43 = vmul.f32 0.25, %v178_v35 }
 0x11c   :  { %v211_v45 = vsel %vm56_vm5, %v209_v42, %v193_v38  ;;  %v210_v53 = vsel %vm53_vm4, %v164_v47, %v180_v43 }
 0x11d   :  { %v192_v40 = vpop.xlane.xlu1 %191  ;;  %v203_v41 = vpop.xlane.xlu0 %202 }
 0x11e   :  { %v207_v44 = vmul.f32 0.25, %v203_v41  ;;  %v194_v46 = vmul.f32 0.25, %v192_v40 }
 0x120   :  { %v213_v48 = vsel %vm59_vm6, %v211_v45, %v207_v44  ;;  %v212_v56 = vsel %vm56_vm5, %v210_v53, %v194_v46 }
 0x121   :  { %v215_v49 = vsel %vm62_vm7, %v213_v48, 0.0  ;;  %v224_v50 = vrot.slane %v213_v48, 4  ;;  %v206_v51 = vpop.xlane.xlu0 %205  ;;  %v28_v52 = vpop.xlane.xlu1 %27 }
 0x122   :  { %v216_v54 = vrot.slane %v215_v49, 4  ;;  %v208_v55 = vmul.f32 0.25, %v206_v51 }
 0x123   :  { %v226_v57 = vsel %vm62_vm7, %v224_v50, 0.0 }
 0x124   :  { %v217_v58 = vadd.f32 %v216_v54, %v215_v49  ;;  %v227_v59 = vrot.slane %v226_v57, 4  ;;  %v214_v60 = vsel %vm59_vm6, %v212_v56, %v208_v55 }
 0x125   :  { %v234_v61 = vsel %vm62_vm7, %v214_v60, 0.0  ;;  %v243_v62 = vrot.slane %v214_v60, 4  ;;  %v35_v63 = vpop.xlane.xlu0 %34  ;;  %v31_v0 = vpop.xlane.xlu1 %30 }
 0x126   :  { %v218_v1 = vrot.slane %v217_v58, 2  ;;  %v228_v2 = vadd.f32 %v227_v59, %v226_v57  ;;  %v235_v3 = vrot.slane %v234_v61, 4  ;;  %v54_v15 = vsel %vm53_vm4, %v28_v52, %v35_v63 }
 0x127   :  { %v245_v4 = vsel %vm62_vm7, %v243_v62, 0.0 }
 0x128   :  { %v219_v5 = vadd.f32 %v218_v1, %v217_v58  ;;  %v229_v6 = vrot.slane %v228_v2, 2  ;;  %v236_v7 = vadd.f32 %v235_v3, %v234_v61  ;;  %v246_v8 = vrot.slane %v245_v4, 4 }
 0x129   :  { %v38_v9 = vpop.xlane.xlu0 %37  ;;  %v42_v10 = vpop.xlane.xlu1 %41 }
 0x12a   :  { %v220_v11 = vrot.slane %v219_v5, 1  ;;  %v230_v12 = vadd.f32 %v229_v6, %v228_v2  ;;  %v237_v13 = vrot.slane %v236_v7, 2  ;;  %v247_v14 = vadd.f32 %v246_v8, %v245_v4 }
 0x12b   :  { %v57_v20 = vsel %vm56_vm5, %v54_v15, %v42_v10  ;;  %v55_v39 = vsel %vm53_vm4, %v31_v0, %v38_v9 }
 0x12c   :  { %v221_v16 = vadd.f32 %v220_v11, %v219_v5  ;;  %v231_v17 = vrot.slane %v230_v12, 1  ;;  %v238_v18 = vadd.f32 %v237_v13, %v236_v7  ;;  %v248_v19 = vrot.slane %v247_v14, 2 }
 0x12d   :  { %v45_v21 = vpop.xlane.xlu0 %44  ;;  %v49_v22 = vpop.xlane.xlu1 %48 }
 0x12e   :  { %v60_v23 = vsel %vm59_vm6, %v57_v20, %v49_v22  ;;  %v232_v24 = vadd.f32 %v231_v17, %v230_v12  ;;  %v239_v26 = vrot.slane %v238_v18, 1  ;;  %v249_v27 = vadd.f32 %v248_v19, %v247_v14 }
 0x12f   :  { %v71_v25 = vsel %vm70_vm8, %v60_v23, -inf  ;;  %v659_v29 = vmul.f32 0.25, %v221_v16  ;;  %v58_v41 = vsel %vm56_vm5, %v55_v39, %v45_v21  ;;  %v63_v51 = vsel %vm62_vm7, %v60_v23, -inf }
 0x130   :  { %v72_v28 = vrot.slane %v71_v25, 4  ;;  %v661_v30 = vmul.f32 0.25, %v232_v24  ;;  %v240_v33 = vadd.f32 %v239_v26, %v238_v18  ;;  %v250_v34 = vrot.slane %v249_v27, 1 }
 0x131   :  { %v323_v31 = vpop.xlane.xlu0 %322  ;;  %v329_v32 = vpop.xlane.xlu1 %328  ;;  %v64_v60 = vrot.slane %v63_v51, 4 }
 0x132   :  { %v73_v35 = vmax.f32 %v71_v25, %v72_v28  ;;  %v253_v36 = vsel %vm92_vm9, %v659_v29, %v661_v30  ;;  %v666_v37 = vmul.f32 0.25, %v240_v33  ;;  %v251_v38 = vadd.f32 %v250_v34, %v249_v27 }
 0x133   :  { %v345_v62 = vsel %vm53_vm4, %v323_v31, %v329_v32  ;;  %v65_v8 = vmax.f32 %v63_v51, %v64_v60 }
 0x134   :  { %v74_v40 = vrot.slane %v73_v35, 2  ;;  %v670_v44 = vmul.f32 0.25, %v251_v38  ;;  %v254_v45 = vsel %vm94_vm10, %v253_v36, %v666_v37 }
 0x135   :  { %v52_v42 = vpop.xlane.xlu0 %51  ;;  %v326_v43 = vpop.xlane.xlu1 %325  ;;  %v66_v21 = vrot.slane %v65_v8, 2 }
 0x136   :  { %v75_v46 = vmax.f32 %v73_v35, %v74_v40  ;;  %v61_v47 = vsel %vm59_vm6, %v58_v41, %v52_v42  ;;  %v679_v50 = vsel %vm96_vm11, %v254_v45, %v670_v44 }
 0x137   :  { %v78_v48 = vsel %vm62_vm7, %v61_v47, -inf  ;;  %v85_v49 = vsel %vm70_vm8, %v61_v47, -inf  ;;  %289 = vrot.lane.b32.xlu1 %v679_v50, %s559_s0  ;;  %v685_v57 = vsel %vm62_vm7, %v679_v50, 0.0  ;;  %v67_v35 = vmax.f32 %v65_v8, %v66_v21 }
 0x138   :  { %v79_v52 = vrot.slane %v78_v48, 4  ;;  %v86_v53 = vrot.slane %v85_v49, 4  ;;  %v76_v54 = vrot.slane %v75_v46, 1 }
 0x139   :  { %v332_v55 = vpop.xlane.xlu0 %331  ;;  %v335_v56 = vpop.xlane.xlu1 %334 }
 0x13a   :  { %v80_v58 = vmax.f32 %v78_v48, %v79_v52  ;;  %v87_v59 = vmax.f32 %v85_v49, %v86_v53  ;;  %v687_v61 = vmax.f32 %v75_v46, %v76_v54  ;;  %v346_v0 = vsel %vm53_vm4, %v326_v43, %v332_v55 }
 0x13b   :  { %v347_v2 = vsel %vm56_vm5, %v345_v62, %v335_v56  ;;  %v68_v46 = vrot.slane %v67_v35, 1 }
 0x13c   :  { %v88_v63 = vrot.slane %v87_v59, 2  ;;  %v81_v1 = vrot.slane %v80_v58, 2  ;;  %99 = vrot.lane.b32.xlu0 %v687_v61, %s560_s23 }
 0x13d   :  { %v338_v3 = vpop.xlane.xlu0 %337  ;;  %v341_v4 = vpop.xlane.xlu1 %340  ;;  %v69_v53 = vmax.f32 %v67_v35, %v68_v46 }
 0x13e   :  { %v89_v5 = vmax.f32 %v87_v59, %v88_v63  ;;  %v349_v6 = vsel %vm59_vm6, %v347_v2, %v341_v4  ;;  %v82_v7 = vmax.f32 %v80_v58, %v81_v1  ;;  %v348_v9 = vsel %vm56_vm5, %v346_v0, %v338_v3 }
 0x13f   :  { %v351_v10 = vsel %vm62_vm7, %v349_v6, inf  ;;  %v358_v11 = vsel %vm70_vm8, %v349_v6, inf  ;;  %v93_v59 = vsel %vm92_vm9, %v69_v53, %v687_v61  ;;  %v283_v2 = vsel %vm126_vm13, %v679_v50, 0.0 }
 0x140   :  { %v352_v12 = vrot.slane %v351_v10, 4  ;;  %v359_v13 = vrot.slane %v358_v11, 4  ;;  %v83_v14 = vrot.slane %v82_v7, 1  ;;  %v90_v16 = vrot.slane %v89_v5, 1 }
 0x141   :  { %v344_v15 = vpop.xlane.xlu0 %343 }
 0x142   :  { %v353_v17 = vmin.f32 %v351_v10, %v352_v12  ;;  %v360_v18 = vmin.f32 %v358_v11, %v359_v13  ;;  %v350_v19 = vsel %vm59_vm6, %v348_v9, %v344_v15  ;;  %v84_v20 = vmax.f32 %v82_v7, %v83_v14 }
 0x143   :  { %v365_v22 = vsel %vm62_vm7, %v350_v19, inf  ;;  %v372_v23 = vsel %vm70_vm8, %v350_v19, inf  ;;  %v91_v28 = vmax.f32 %v89_v5, %v90_v16  ;;  %vm466_vm8 = vcmask 252928  }
 0x144   :  { %v354_v24 = vrot.slane %v353_v17, 2  ;;  %v361_v25 = vrot.slane %v360_v18, 2  ;;  %v366_v26 = vrot.slane %v365_v22, 4  ;;  %v373_v27 = vrot.slane %v372_v23, 4  ;;  %103 = vrot.lane.b32.xlu1 %v84_v20, %s555_s17 }
 0x145   :  { %v95_v60 = vsel %vm94_vm10, %v93_v59, %v84_v20 }
 0x146   :  { %v355_v31 = vmin.f32 %v353_v17, %v354_v24  ;;  %v362_v32 = vmin.f32 %v360_v18, %v361_v25  ;;  %v367_v33 = vmin.f32 %v365_v22, %v366_v26  ;;  %v374_v34 = vmin.f32 %v372_v23, %v373_v27 }
 0x147   :  { %v97_v62 = vsel %vm96_vm11, %v95_v60, %v91_v28 }
 0x148   :  { %v356_v36 = vrot.slane %v355_v31, 1  ;;  %v363_v38 = vrot.slane %v362_v32, 1  ;;  %v368_v39 = vrot.slane %v367_v33, 2  ;;  %v375_v40 = vrot.slane %v374_v34, 2  ;;  %107 = vrot.lane.b32.xlu1 %v91_v28, %s561_s24 }
 0x149   :  { %v115_v63 = vsel %vm62_vm7, %v97_v62, -inf  ;;  %v131_v0 = vsel %vm130_vm12, %v97_v62, -inf  ;;  %v127_v1 = vsel %vm126_vm13, %v97_v62, -inf }
 0x14a   :  { %v703_v41 = vmin.f32 %v355_v31, %v356_v36  ;;  %v364_v42 = vmin.f32 %v362_v32, %v363_v38  ;;  %v369_v43 = vmin.f32 %v367_v33, %v368_v39  ;;  %v376_v45 = vmin.f32 %v374_v34, %v375_v40 }
 0x14c   :  { %v370_v47 = vrot.slane %v369_v43, 1  ;;  %v377_v48 = vrot.slane %v376_v45, 1  ;;  %v379_v49 = vsel %vm92_vm9, %v703_v41, %v364_v42  ;;  %vm468_vm9 = vcmask 384000  }
 0x14e   :  { %v371_v51 = vmin.f32 %v369_v43, %v370_v47  ;;  %v707_v52 = vmin.f32 %v376_v45, %v377_v48 }
 0x150   :  { %v380_v54 = vsel %vm94_vm10, %v379_v49, %v371_v51  ;;  %vm470_vm10 = vcmask 515072  }
 0x151   :  { %v381_v55 = vsel %vm96_vm11, %v380_v54, %v707_v52 }
 0x152   :  { %v410_v56 = vsel %vm130_vm12, %v381_v55, inf  ;;  %v713_v58 = vsel %vm62_vm7, %v381_v55, inf  ;;  %v407_v5 = vsel %vm126_vm13, %v381_v55, inf  ;;  %vm464_vm7 = vcmask 121856  }
 0x15b   :  { %116 = vmax.xlane.f32.xlu0 %v115_v63 }
 0x15f   :  { %132 = vmax.xlane.f32.xlu0 %v131_v0 }
 0x16c   :  { %128 = vmax.xlane.f32.xlu1 %v127_v1 }
 0x170   :  { %284 = vadd.xlane.f32.xlu1 %v283_v2 }
 0x1a9   :  { %v290_v3 = vpop.permute.xlu1 %289 }
 0x1aa   :  { %v292_v4 = vsel %vm126_vm13, %v290_v3, 0.0 }
 0x1ab   :  { %293 = vadd.xlane.f32.xlu1 %v292_v4 }
 0x1ae   :  { %v100_v61 = vpop.permute.xlu0 %99 }
 0x1af   :  { %408 = vmin.xlane.f32.xlu1 %v407_v5  ;;  %v110_v6 = vsel %vm25_vm0, %v69_v53, %v100_v61 }
 0x1b3   :  { %411 = vmin.xlane.f32.xlu1 %v410_v56 }
 0x1b6   :  { %v104_v7 = vpop.permute.xlu1 %103 }
 0x1b7   :  { %v112_v8 = vsel %vm111_vm14, %v110_v6, %v104_v7 }
 0x1ba   :  { %v108_v9 = vpop.permute.xlu1 %107 }
 0x1bb   :  { %v724_v10 = vsel %vm113_vm15, %v112_v8, %v108_v9 }
 0x1c4   :  { %257 = vrot.lane.b32.xlu1 %v661_v30, %s560_s23 }
 0x1c8   :  { %383 = vrot.lane.b32.xlu1 %v364_v42, %s560_s23 }
 0x1cc   :  { %387 = vrot.lane.b32.xlu1 %v371_v51, %s555_s17 }
 0x1e8   :  { %v730_v50 = vpop.xlane.xlu0 %116 }
 0x1ec   :  { %v133_v11 = vpop.xlane.xlu0 %132 }
 0x1f9   :  { %v129_v12 = vpop.xlane.xlu1 %128 }
 0x1fa   :  { %v134_v13 = vsel %vm53_vm4, %v129_v12, %v133_v11 }
 0x1fb   :  { %v144_v14 = vsel %vm143_vm1, %v134_v13, -inf  ;;  %v136_v46 = vsel %vm135_vm2, %v134_v13, -inf }
 0x1fc   :  { %v145_v15 = vrot.slane %v144_v14, 4  ;;  %v137_v47 = vrot.slane %v136_v46, 4 }
 0x1fd   :  { %v285_v30 = vpop.xlane.xlu1 %284 }
 0x1fe   :  { %v146_v16 = vmax.f32 %v144_v14, %v145_v15  ;;  %v287_v22 = vmul.f32 0.5, %v285_v30  ;;  %v138_v48 = vmax.f32 %v136_v46, %v137_v47 }
 0x200   :  { %v147_v17 = vrot.slane %v146_v16, 2  ;;  %v139_v49 = vrot.slane %v138_v48, 2 }
 0x202   :  { %v148_v18 = vmax.f32 %v146_v16, %v147_v17  ;;  %v140_v51 = vmax.f32 %v138_v48, %v139_v49 }
 0x204   :  { %v149_v19 = vrot.slane %v148_v18, 1  ;;  %v141_v53 = vrot.slane %v140_v51, 1 }
 0x206   :  { %v150_v20 = vmax.f32 %v148_v18, %v149_v19  ;;  %v142_v54 = vmax.f32 %v140_v51, %v141_v53 }
 0x208   :  { %152 = vrot.lane.b32.xlu0 %v150_v20, %s562_s25 }
 0x20c   :  { %261 = vrot.lane.b32.xlu0 %v666_v37, %s555_s17 }
 0x210   :  { %265 = vrot.lane.b32.xlu0 %v670_v44, %s561_s24 }
 0x22f   :  { %272 = vadd.xlane.f32.xlu0 %v685_v57 }
 0x238   :  { %v294_v21 = vpop.xlane.xlu1 %293 }
 0x239   :  { %v295_v23 = vmul.f32 0.5, %v294_v21 }
 0x23b   :  { %v296_v24 = vsel %vm53_vm4, %v287_v22, %v295_v23 }
 0x23c   :  { %v306_v25 = vrot.slane %v296_v24, 2  ;;  %v409_v26 = vpop.xlane.xlu1 %408  ;;  %v297_v59 = vsel %vm135_vm2, %v296_v24, 0.0 }
 0x23d   :  { %v298_v60 = vrot.slane %v297_v59, 4 }
 0x23e   :  { %v308_v27 = vsel %vm135_vm2, %v306_v25, 0.0 }
 0x23f   :  { %v309_v28 = vrot.slane %v308_v27, 4  ;;  %v299_v62 = vadd.f32 %v298_v60, %v297_v59 }
 0x240   :  { %v412_v31 = vpop.xlane.xlu1 %411 }
 0x241   :  { %v413_v37 = vsel %vm53_vm4, %v409_v26, %v412_v31  ;;  %v310_v32 = vadd.f32 %v309_v28, %v308_v27  ;;  %v300_v0 = vrot.slane %v299_v62, 2 }
 0x242   :  { %v421_v44 = vsel %vm143_vm1, %v413_v37, inf }
 0x243   :  { %v422_v33 = vrot.slane %v421_v44, 4  ;;  %v311_v57 = vrot.slane %v310_v32, 2  ;;  %v301_v4 = vadd.f32 %v300_v0, %v299_v62 }
 0x244   :  { %v258_v1 = vpop.permute.xlu1 %257 }
 0x245   :  { %v423_v34 = vmin.f32 %v421_v44, %v422_v33  ;;  %v312_v35 = vadd.f32 %v311_v57, %v310_v32  ;;  %v302_v6 = vrot.slane %v301_v4, 1 }
 0x247   :  { %v424_v36 = vrot.slane %v423_v34, 2  ;;  %v313_v38 = vrot.slane %v312_v35, 1  ;;  %v303_v11 = vadd.f32 %v302_v6, %v301_v4 }
 0x248   :  { %v384_v61 = vpop.permute.xlu1 %383 }
 0x249   :  { %v425_v39 = vmin.f32 %v423_v34, %v424_v36  ;;  %v314_v40 = vadd.f32 %v313_v38, %v312_v35  ;;  %v304_v18 = vmul.f32 0.5, %v303_v11  ;;  %v394_v36 = vsel %vm25_vm0, %v703_v41, %v384_v61 }
 0x24b   :  { %v315_v42 = vmul.f32 0.5, %v314_v40  ;;  %v426_v43 = vrot.slane %v425_v39, 1 }
 0x24c   :  { %v388_v13 = vpop.permute.xlu1 %387 }
 0x24d   :  { %317 = vrot.lane.b32.xlu1 %v315_v42, %s562_s25  ;;  %v427_v45 = vmin.f32 %v425_v39, %v426_v43  ;;  %v395_v38 = vsel %vm111_vm14, %v394_v36, %v388_v13 }
 0x24f   :  { %429 = vrot.lane.b32.xlu0 %v427_v45, %s562_s25 }
 0x251   :  { %391 = vrot.lane.b32.xlu1 %v707_v52, %s561_s24  ;;  %v414_v52 = vsel %vm135_vm2, %v413_v37, inf  ;;  %v268_v37 = vsel %vm25_vm0, %v659_v29, %v258_v1  ;;  %vm460_vm0 = vcmask 56320  }
 0x252   :  { %v415_v63 = vrot.slane %v414_v52, 4 }
 0x254   :  { %v416_v2 = vmin.f32 %v414_v52, %v415_v63 }
 0x256   :  { %v417_v5 = vrot.slane %v416_v2, 2 }
 0x258   :  { %v418_v9 = vmin.f32 %v416_v2, %v417_v5 }
 0x25a   :  { %v419_v15 = vrot.slane %v418_v9, 1 }
 0x25c   :  { %v420_v21 = vmin.f32 %v418_v9, %v419_v15 }
 0x275   :  { %398 = vmin.xlane.f32.xlu1 %v713_v58  ;;  %v119_v58 = vsel %vm118_vm3, %v730_v50, -inf }
 0x276   :  { %v120_v7 = vrot.slane %v119_v58, 4 }
 0x278   :  { %v121_v12 = vmax.f32 %v119_v58, %v120_v7 }
 0x27a   :  { %v153_v55 = vpop.permute.xlu0 %152  ;;  %v122_v19 = vrot.slane %v121_v12, 2 }
 0x27b   :  { %v155_v56 = vsel %vm56_vm5, %v142_v54, %v153_v55 }
 0x27c   :  { %434 = vrot.lane.b32.xlu0 %v155_v56, %s563_s26  ;;  %v123_v25 = vmax.f32 %v121_v12, %v122_v19 }
 0x27e   :  { %v262_v3 = vpop.permute.xlu0 %261  ;;  %v124_v28 = vrot.slane %v123_v25, 1 }
 0x27f   :  { %v269_v32 = vsel %vm111_vm14, %v268_v37, %v262_v3 }
 0x280   :  { %v125_v57 = vmax.f32 %v123_v25, %v124_v28 }
 0x282   :  { %v266_v8 = vpop.permute.xlu0 %265 }
 0x283   :  { %v270_v33 = vsel %vm113_vm15, %v269_v32, %v266_v8 }
 0x2bc   :  { %v273_v14 = vpop.xlane.xlu0 %272 }
 0x2bd   :  { %v274_v16 = vmul.f32 0.25, %v273_v14 }
 0x2bf   :  { %v275_v17 = vsel %vm118_vm3, %v274_v16, 0.0  ;;  %v318_v30 = vpop.permute.xlu1 %317 }
 0x2c0   :  { %v276_v20 = vrot.slane %v275_v17, 4  ;;  %v320_v50 = vsel %vm56_vm5, %v304_v18, %v318_v30 }
 0x2c1   :  { %v430_v23 = vpop.permute.xlu0 %429  ;;  %438 = vrot.lane.b32.xlu1 %v320_v50, %s564_s27 }
 0x2c2   :  { %v277_v22 = vadd.f32 %v276_v20, %v275_v17  ;;  %v432_v24 = vsel %vm56_vm5, %v420_v21, %v430_v23 }
 0x2c3   :  { %442 = vrot.lane.b32.xlu0 %v432_v24, %s565_s28  ;;  %v392_v35 = vpop.permute.xlu1 %391 }
 0x2c4   :  { %v278_v26 = vrot.slane %v277_v22, 2  ;;  %v396_v39 = vsel %vm113_vm15, %v395_v38, %v392_v35 }
 0x2c6   :  { %v279_v27 = vadd.f32 %v278_v26, %v277_v22 }
 0x2c7   :  { %446 = vrot.lane.b32.xlu0 %v724_v10, %s566_s29 }
 0x2c8   :  { %v280_v31 = vrot.slane %v279_v27, 1 }
 0x2ca   :  { %v281_v44 = vadd.f32 %v280_v31, %v279_v27 }
 0x2cb   :  { %450 = vrot.lane.b32.xlu0 %v270_v33, %s567_s30 }
 0x2cc   :  { %v282_v34 = vmul.f32 0.25, %v281_v44 }
 0x2ce   :  { %v457_v10 = vsel %vm53_vm4, %v125_v57, %v282_v34  ;;  %vm462_vm4 = vcmask 89088  }
 0x2cf   :  { %454 = vrot.lane.b32.xlu0 %v396_v39, %s568_s2 }
 0x2ee   :  { %v435_v48 = vpop.permute.xlu0 %434 }
 0x302   :  { %v399_v29 = vpop.xlane.xlu1 %398 }
 0x303   :  { %v400_v40 = vsel %vm118_vm3, %v399_v29, inf }
 0x304   :  { %v401_v42 = vrot.slane %v400_v40, 4 }
 0x306   :  { %v402_v43 = vmin.f32 %v400_v40, %v401_v42 }
 0x308   :  { %v403_v45 = vrot.slane %v402_v43, 2 }
 0x30a   :  { %v404_v46 = vmin.f32 %v402_v43, %v403_v45 }
 0x30c   :  { %v405_v47 = vrot.slane %v404_v46, 1 }
 0x30e   :  { %v406_v49 = vmin.f32 %v404_v46, %v405_v47 }
 0x310   :  { %v458_v41 = vsel %vm56_vm5, %v457_v10, %v406_v49 }
 0x311   :  { %v459_v55 = vsel %vm59_vm6, %v458_v41, %v435_v48 }
 0x333   :  { %v439_v53 = vpop.permute.xlu1 %438 }
 0x334   :  { %v461_v56 = vsel %vm460_vm0, %v459_v55, %v439_v53 }
 0x335   :  { %v443_v51 = vpop.permute.xlu0 %442 }
 0x336   :  { %v463_v60 = vsel %vm462_vm4, %v461_v56, %v443_v51 }
 0x339   :  { %v447_v54 = vpop.permute.xlu0 %446 }
 0x33a   :  { %v465_v52 = vsel %vm464_vm7, %v463_v60, %v447_v54 }
 0x33d   :  { %v451_v59 = vpop.permute.xlu0 %450 }
 0x33e   :  { %v467_v62 = vsel %vm466_vm8, %v465_v52, %v451_v59 }
 0x341   :  { %v455_v63 = vpop.permute.xlu0 %454 }
 0x342   :  { %v469_v0 = vsel %vm468_vm9, %v467_v62, %v455_v63 }
 0x343   :  { %v471_v1 = vsel %vm470_vm10, %v469_v0, 0.0 }
 0x344   :  { %472 = vst [vmem:[#allocation5] sm:$0x1] %v471_v1 }
 0x345   :  { %538 = shalt.err (!%p535_p12)
}
 0x346   :  { %s539_s9 = scalar_lea.hbm %s784_s1, 16 }
 0x347   :  { %p540_p13 = scmp.ne.s32.totalorder %s784_s1, %s539_s9  ;;  %p543_p0 = scmp.lt.u32.totalorder %s539_s9, %s784_s1 }
 0x349   :  { %p545_p1 = pnand %p543_p0, %p540_p13 }
 0x34b   :  { %548 = shalt.err (!%p545_p1)
}
 0x34c   :  { %482 = dma.vmem_to_hbm [thread:$0]  %s480_s4, 16, %s784_s1, [#allocation4]  }
 0x34d   :  { %551 = dma.done.wait [#allocation4], 16  }
 0x34e   :  { %552 = vsyncadd [#allocation4], 4294967280 }
 0x34f   :  { %486 = vsyncpa [#allocation3], 1 }
 0x350   :  { %487 = vsyncpa [#allocation4], 1 }

</bundles_post_ra>
